<compile_context>
chip_gen: v7x
topology: tpu7x:2x2x1
jax: 0.10.0
libtpu: 0.0.40
codegen_flags: <defaults>
</compile_context>

<pallas_src>
import jax
import jax.numpy as jnp
from jax.experimental import pallas as pl
from jax.experimental.pallas import tpu as pltpu

LANES = 128
TARGET_TILE_BYTES = 2 * 1024 * 1024  # ~2 MiB per block: DMA-friendly, VMEM-safe


def _threshold_kernel(thr_ref, x_ref, o_ref):
    # thr_ref: (1, 1) f32 scalar in SMEM.
    thr = thr_ref[0, 0].astype(x_ref.dtype)
    o_ref[...] = x_ref[...] - thr


def _tile_rows_for(rows, itemsize):
    """Largest multiple-of-8 row count whose (rows, 128) block is <= ~2 MiB."""
    max_rows = max(8, (TARGET_TILE_BYTES // (LANES * itemsize)) // 8 * 8)
    if rows <= max_rows:
        # Full-extent block (allowed even if not a multiple of 8).
        return rows
    return max_rows


def threshold_layer(x, threshold):
    """y = x - threshold. x: any shape, threshold: scalar."""
    orig_shape = x.shape
    orig_dtype = x.dtype
    n = x.size

    x_flat = x.reshape(-1)                      # metadata-only for contiguous x
    pad = (-n) % LANES                          # pad only if truly unavoidable
    if pad:
        x_flat = jnp.pad(x_flat, (0, pad))
    rows = x_flat.size // LANES
    x2d = x_flat.reshape(rows, LANES)

    thr = jnp.asarray(threshold, dtype=jnp.float32).reshape(1, 1)

    itemsize = jnp.dtype(orig_dtype).itemsize
    tile_rows = _tile_rows_for(rows, itemsize)
    grid = (pl.cdiv(rows, tile_rows),)          # cdiv: never drop remainder rows

    out2d = pl.pallas_call(
        _threshold_kernel,
        out_shape=jax.ShapeDtypeStruct((rows, LANES), orig_dtype),
        grid_spec=pltpu.PrefetchScalarGridSpec(
            num_scalar_prefetch=0,
            grid=grid,
            in_specs=[
                pl.BlockSpec(memory_space=pltpu.SMEM),               # threshold
                pl.BlockSpec((tile_rows, LANES), lambda i: (i, 0)),  # x tile
            ],
            out_specs=pl.BlockSpec((tile_rows, LANES), lambda i: (i, 0)),
        ),
        compiler_params=pltpu.CompilerParams(
            dimension_semantics=("parallel",),
            vmem_limit_bytes=32 * 1024 * 1024,  # headroom for 4x ~2 MiB buffers
        ),
        cost_estimate=pl.CostEstimate(
            flops=n, transcendentals=0, bytes_accessed=2 * n * itemsize
        ),
    )(thr, x2d)

    out_flat = out2d.reshape(-1)
    if pad:
        out_flat = out_flat[:n]
    return out_flat.reshape(orig_shape)


if __name__ == "__main__":
    key = jax.random.PRNGKey(0)
    kx, kt = jax.random.split(key)

    # Mimic torch.FloatTensor(1).uniform_(0.1, 0.9) parameter init.
    threshold = jax.random.uniform(kt, (1,), minval=0.1, maxval=0.9,
                                   dtype=jnp.float32)[0]

    # Main check: lane-aligned flat size (2*4*16*16 = 2048) -> zero-copy wrapper.
    x = jax.random.normal(kx, (2, 4, 16, 16), dtype=jnp.float32)
    y = jax.block_until_ready(threshold_layer(x, threshold))
    ref = x - threshold
    assert y.shape == x.shape and y.dtype == x.dtype
    assert jnp.allclose(y, ref, atol=1e-6), "mismatch vs reference (aligned)"

    # Secondary check: ragged (non-lane-aligned) shape exercises the padded
    # path and the cdiv grid with a full-extent block.
    x2 = jax.random.normal(jax.random.PRNGKey(1), (3, 5, 7, 11), dtype=jnp.float32)
    y2 = jax.block_until_ready(threshold_layer(x2, threshold))
    assert jnp.allclose(y2, x2 - threshold, atol=1e-6), "mismatch vs reference (ragged)"

    # bf16 path: scalar-only cast keeps the tile in bf16 on the VPU.
    x3 = jax.random.normal(jax.random.PRNGKey(2), (2, 4, 16, 16), dtype=jnp.bfloat16)
    y3 = jax.block_until_ready(threshold_layer(x3, threshold))
    assert y3.dtype == jnp.bfloat16
    assert jnp.allclose(y3.astype(jnp.float32),
                        (x3 - threshold.astype(jnp.bfloat16)).astype(jnp.float32),
                        atol=1e-2), "mismatch vs reference (bf16)"

    print("KERNEL_OK")
</pallas_src>

<mosaic_0001>
module attributes {stable_mosaic.version = 11 : i64} {
  func.func @_threshold_kernel(%arg0: i32, %arg1: memref<1x1xf32, #tpu.memory_space<smem>>, %arg2: memref<16x128xf32, #tpu.memory_space<vmem>>, %arg3: memref<16x128xf32, #tpu.memory_space<vmem>>) attributes {dimension_semantics = [#tpu.dimension_semantics<parallel>], iteration_bounds = array<i64: 1>, scalar_prefetch = 0 : i64, scratch_operands = 0 : i64, tpu.core_type = #tpu.core_type<tc>, window_params = [{transform_indices = @transform_0, window_bounds = array<i64: 1, 1>}, {transform_indices = @transform_1, window_bounds = array<i64: 16, 128>}, {transform_indices = @transform_2, window_bounds = array<i64: 16, 128>}]} {
    %c0 = arith.constant 0 : index
    %c0_0 = arith.constant 0 : index
    %0 = memref.load %arg1[%c0, %c0_0] : memref<1x1xf32, #tpu.memory_space<smem>>
    %c0_1 = arith.constant 0 : index
    %c0_2 = arith.constant 0 : index
    %1 = vector.load %arg2[%c0_1, %c0_2] : memref<16x128xf32, #tpu.memory_space<vmem>>, vector<16x128xf32>
    %2 = vector.broadcast %0 : f32 to vector<16x128xf32>
    %3 = arith.subf %1, %2 : vector<16x128xf32>
    %c0_3 = arith.constant 0 : index
    %c0_4 = arith.constant 0 : index
    %4 = vector.load %arg3[%c0_3, %c0_4] : memref<16x128xf32, #tpu.memory_space<vmem>>, vector<16x128xf32>
    tpu.vector_store %arg3[%c0_3, %c0_4], %3 {strides = array<i32>} : memref<16x128xf32, #tpu.memory_space<vmem>>, vector<16x128xf32>,
    return
  }
  func.func @transform_0(%arg0: i32) -> (i32, i32) {
    %c0_i32 = arith.constant 0 : i32
    %c0_i32_0 = arith.constant 0 : i32
    %c0_i32_1 = arith.constant 0 : i32
    return %c0_i32, %c0_i32_0 : i32, i32
  }
  func.func @transform_1(%arg0: i32) -> (i32, i32) {
    %c0_i32 = arith.constant 0 : i32
    %c0_i32_0 = arith.constant 0 : i32
    return %arg0, %c0_i32 : i32, i32
  }
  func.func @transform_2(%arg0: i32) -> (i32, i32) {
    %c0_i32 = arith.constant 0 : i32
    %c0_i32_0 = arith.constant 0 : i32
    return %arg0, %c0_i32 : i32, i32
  }
}

</mosaic_0001>

<bundles_post_ra>
// kernel: tpu_custom_call.1
= control target key start
LH: loop header
LB: loop body
LE: loop exit
PB: predicated region body
PF: predicated region fallthrough
CT: control target
= control target key end

     0   :  { %8 = vsyncpa [#allocation4], 0  ;;  %s156_s0 = inlined_call_operand.<no memory space> [shape: f32[1,1], index: 0, kind: input, shape index: {}]   ;;  %s157_s1 = inlined_call_operand.hbm [shape: f32[16,128], index: 1, kind: input, shape index: {}]   ;;  %s158_s2 = inlined_call_operand.hbm [shape: f32[16,128], index: 2, kind: output, shape index: {}]  }
   0x1   :  { %9 = vsyncpa [#allocation5], 0  ;;  %s104_s9 = smov [#allocation3]   ;;  %s56_s13 = scalar_lea.hbm %s157_s1, 256 }
   0x2   :  { %s17_s10 = sshll.u32 %s104_s9, 4  ;;  %p57_p0 = scmp.ne.s32.totalorder %s157_s1, %s56_s13  ;;  %s18_s10 = int_to_ptr.vmem [resolvable:$true] %s17_s10 }
   0x3   :  { %p60_p1 = scmp.lt.u32.totalorder %s56_s13, %s157_s1 }
   0x5   :  { %p62_p2 = pnand %p60_p1, %p57_p0 }
   0x7   :  { %65 = shalt.err (!%p62_p2)
}
   0x8   :  { %s66_s18 = scalar_lea.vmem %s18_s10, 256  ;;  %p71_p4 = scmp.lt.s32.totalorder %s18_s10, %s18_s10 }
   0x9   :  { %p67_p3 = scmp.ne.s32.totalorder %s18_s10, %s66_s18  ;;  %p72_p5 = scmp.lt.s32.totalorder %s66_s18, %s66_s18 }
   0xb   :  { %p73_p6 = por %p72_p5, %p71_p4 }
   0xd   :  { %p74_p7 = pnand %p73_p6, %p67_p3 }
   0xf   :  { %77 = shalt.err (!%p74_p7)
}
  0x10   :  { %s105_s19 = smov 128   ;;  %s106_s20 = smov 8  }
  0x11   :  { %23 = dma.hbm_to_vmem [thread:$0]  %s157_s1, 256, %s18_s10, [#allocation4], %s105_s19, %s105_s19, %s106_s20  }
  0x12   :  { %100 = dma.done.wait [#allocation4], 256  }
  0x13   :  { %101 = vsyncadd [#allocation4], 4294967040  ;;  %v30_v0 = vstv %s156_s0  ;;  %s107_s25 = smov [#allocation6]   ;;  %v28_v1 = vld [vmem:[#allocation3] sm:$0xff]  ;;  %v29_v2 = vld [vmem:[#allocation3 + $0x8] sm:$0xff] }
  0x14   :  { %s40_s26 = sshll.u32 %s107_s25, 4  ;;  %v31_v3 = vsub.f32 %v28_v1, %v30_v0  ;;  %v32_v4 = vsub.f32 %v29_v2, %v30_v0  ;;  %s41_s26 = int_to_ptr.vmem [resolvable:$true] %s40_s26 }
  0x15   :  { %s78_s27 = scalar_lea.vmem %s41_s26, 256  ;;  %p83_p9 = scmp.lt.s32.totalorder %s41_s26, %s41_s26 }
  0x16   :  { %33 = vst [vmem:[#allocation6] sm:$0xff] %v31_v3  ;;  %34 = vst [vmem:[#allocation6 + $0x8] sm:$0xff] %v32_v4  ;;  %p79_p8 = scmp.ne.s32.totalorder %s41_s26, %s78_s27  ;;  %p84_p10 = scmp.lt.s32.totalorder %s78_s27, %s78_s27 }
  0x18   :  { %p85_p11 = por %p84_p10, %p83_p9 }
  0x1a   :  { %p86_p12 = pnand %p85_p11, %p79_p8 }
  0x1c   :  { %89 = shalt.err (!%p86_p12)
}
  0x1d   :  { %s90_s0 = scalar_lea.hbm %s158_s2, 256 }
  0x1e   :  { %p91_p13 = scmp.ne.s32.totalorder %s158_s2, %s90_s0  ;;  %p94_p0 = scmp.lt.u32.totalorder %s90_s0, %s158_s2 }
  0x20   :  { %p96_p1 = pnand %p94_p0, %p91_p13 }
  0x22   :  { %99 = shalt.err (!%p96_p1)
}
  0x23   :  { %46 = dma.vmem_to_hbm [thread:$0]  %s41_s26, 256, %s158_s2, [#allocation5], %s105_s19, %s105_s19, %s106_s20  }
  0x24   :  { %102 = dma.done.wait [#allocation5], 256  }
  0x25   :  { %103 = vsyncadd [#allocation5], 4294967040 }
  0x26   :  { %50 = vsyncpa [#allocation4], 1 }
  0x27   :  { %51 = vsyncpa [#allocation5], 1 }

</bundles_post_ra>
